<compile_context>
chip_gen: v6e
topology: v6e:2x2x1
jax: 0.10.0
libtpu: 0.0.40
codegen_flags: <defaults>
</compile_context>

<pallas_src>
import functools

import jax
import jax.numpy as jnp
from jax import lax
from jax.experimental import pallas as pl
from jax.experimental.pallas import tpu as pltpu

BN_EPS = 1e-5
VMEM_LIMIT = 28 * 1024 * 1024  # safe on v5e/v6e (128 MiB) and v7x (64 MiB)


def _round_up(x, m):
    return ((x + m - 1) // m) * m


# ----------------------------------------------------------------------------
# Kernels (1-D grid tiled over the rows/lane axis)
# ----------------------------------------------------------------------------
def _conv1_stats_kernel(x_ref, w1_ref, b1_ref, s_ref, q_ref, *, rows, tile_r):
    """Accumulate per-channel sum / sum-of-squares of y = relu(W1 x + b1)."""
    i = pl.program_id(0)
    last = pl.num_programs(0) - 1

    @pl.when(i == 0)
    def _():
        s_ref[...] = jnp.zeros_like(s_ref)
        q_ref[...] = jnp.zeros_like(q_ref)

    # (cout, tile_r) = (cout, cin) @ (cin, tile_r); bf16 operands, f32 acc.
    y = jnp.dot(w1_ref[...], x_ref[...], preferred_element_type=jnp.float32)
    y = jnp.maximum(y + b1_ref[...], 0.0)

    @pl.when(i != last)
    def _():
        s_ref[...] += jnp.sum(y, axis=1, keepdims=True)
        q_ref[...] += jnp.sum(y * y, axis=1, keepdims=True)

    @pl.when(i == last)  # mask zero-padded tail columns out of the stats
    def _():
        col = lax.broadcasted_iota(jnp.int32, y.shape, 1) + i * tile_r
        ym = jnp.where(col < rows, y, 0.0)
        s_ref[...] += jnp.sum(ym, axis=1, keepdims=True)
        q_ref[...] += jnp.sum(ym * ym, axis=1, keepdims=True)


def _conv1_conv2_stats_kernel(x_ref, w1_ref, b1_ref, w2_ref, b2_ref,
                              z_ref, s_ref, q_ref, *, rows, tile_r):
    """z = relu(W2' relu(W1 x + b1) + b2'); BN1 already folded into (W2', b2').

    Conv1 is recomputed (K = cin is tiny) instead of reading a y slab from HBM.
    """
    i = pl.program_id(0)
    last = pl.num_programs(0) - 1

    @pl.when(i == 0)
    def _():
        s_ref[...] = jnp.zeros_like(s_ref)
        q_ref[...] = jnp.zeros_like(q_ref)

    y = jnp.dot(w1_ref[...], x_ref[...], preferred_element_type=jnp.float32)
    y = jnp.maximum(y + b1_ref[...], 0.0)

    z = jnp.dot(w2_ref[...], y.astype(jnp.bfloat16),
                preferred_element_type=jnp.float32)
    z = jnp.maximum(z + b2_ref[...], 0.0)

    @pl.when(i != last)
    def _():
        s_ref[...] += jnp.sum(z, axis=1, keepdims=True)
        q_ref[...] += jnp.sum(z * z, axis=1, keepdims=True)

    @pl.when(i == last)
    def _():
        col = lax.broadcasted_iota(jnp.int32, z.shape, 1) + i * tile_r
        zm = jnp.where(col < rows, z, 0.0)
        s_ref[...] += jnp.sum(zm, axis=1, keepdims=True)
        q_ref[...] += jnp.sum(zm * zm, axis=1, keepdims=True)

    z_ref[...] = z.astype(z_ref.dtype)


def _bn2_kernel(z_ref, scale_ref, shift_ref, o_ref):
    """out = z * scale + shift (BN2 scale/shift precomputed from batch stats)."""
    o_ref[...] = z_ref[...].astype(jnp.float32) * scale_ref[...] + shift_ref[...]


# ----------------------------------------------------------------------------
# Wrapper
# ----------------------------------------------------------------------------
def double_conv_flair(x_nchw, params, *, tile_r=8192):
    """Forward pass of DoubleConvFLAIR. Input NCHW f32, output NCHW f32."""
    w1, b1, g1, be1, w2, b2, g2, be2 = params     # w1:(cout,cin) w2:(cout,cout)
    n, cin, h, w = x_nchw.shape
    cout = w1.shape[0]
    rows = n * h * w

    # NCHW -> channel-major slab (cin, rows).  Only the (n, c) axes swap; the
    # contiguous HW block stays contiguous (free when n == 1).  Store bf16.
    xf = jnp.transpose(x_nchw.reshape(n, cin, h * w), (1, 0, 2))
    xf = xf.reshape(cin, rows).astype(jnp.bfloat16)

    # Lane-dense tile size (multiple of 128), capped so double-buffered blocks
    # of the widest pass (C: bf16 in + f32 out) stay inside the VMEM budget.
    tile_r = max(128, min(_round_up(tile_r, 128), _round_up(rows, 128)))
    max_tile = (VMEM_LIMIT // 2) // (cout * (4 + 2) * 2)
    tile_r = min(tile_r, max(128, (max_tile // 128) * 128))
    rows_p = _round_up(rows, tile_r)
    if rows_p != rows:
        xf = jnp.pad(xf, ((0, 0), (0, rows_p - rows)))
    grid = (rows_p // tile_r,)

    def lane_tiled(c):
        return pl.BlockSpec((c, tile_r), lambda i: (0, i))

    def resident(shape):
        return pl.BlockSpec(shape, lambda i: (0, 0))

    # Pre-cast weights to bf16 once (no per-tile in-kernel casts).
    w1b = w1.astype(jnp.bfloat16)

    stat_shape = jax.ShapeDtypeStruct((cout, 1), jnp.float32)
    cp = lambda sem: pltpu.CompilerParams(dimension_semantics=(sem,),
                                          vmem_limit_bytes=VMEM_LIMIT)

    # --- pass A: BN1 batch statistics of relu(conv1(x)) ----------------------
    s1, q1 = pl.pallas_call(
        functools.partial(_conv1_stats_kernel, rows=rows, tile_r=tile_r),
        grid=grid,
        in_specs=[lane_tiled(cin), resident((cout, cin)), resident((cout, 1))],
        out_specs=[resident((cout, 1)), resident((cout, 1))],
        out_shape=[stat_shape, stat_shape],
        compiler_params=cp("arbitrary"),
        cost_estimate=pl.CostEstimate(
            flops=2 * rows_p * cin * cout + 4 * rows_p * cout,
            transcendentals=0,
            bytes_accessed=2 * rows_p * cin + 2 * cin * cout + 12 * cout),
    )(xf, w1b, b1)

    # --- fold BN1 into conv2 (tiny O(cout^2) XLA op) --------------------------
    inv_n = 1.0 / rows
    mean1 = s1 * inv_n
    var1 = jnp.maximum(q1 * inv_n - mean1 * mean1, 0.0)   # biased batch variance
    scale1 = g1 * lax.rsqrt(var1 + BN_EPS)                # (cout, 1)
    shift1 = be1 - mean1 * scale1                         # (cout, 1)
    w2f = (w2 * scale1.reshape(1, cout)).astype(jnp.bfloat16)
    b2f = w2 @ shift1 + b2                                # (cout, 1) f32

    # --- pass B: conv1 recompute -> conv2(+folded BN1) + relu + BN2 stats -----
    z, s2, q2 = pl.pallas_call(
        functools.partial(_conv1_conv2_stats_kernel, rows=rows, tile_r=tile_r),
        grid=grid,
        in_specs=[lane_tiled(cin), resident((cout, cin)), resident((cout, 1)),
                  resident((cout, cout)), resident((cout, 1))],
        out_specs=[lane_tiled(cout), resident((cout, 1)), resident((cout, 1))],
        out_shape=[jax.ShapeDtypeStruct((cout, rows_p), jnp.bfloat16),
                   stat_shape, stat_shape],
        compiler_params=cp("arbitrary"),
        cost_estimate=pl.CostEstimate(
            flops=2 * rows_p * cout * (cin + cout) + 6 * rows_p * cout,
            transcendentals=0,
            bytes_accessed=(2 * rows_p * cin + 2 * rows_p * cout
                            + 2 * cout * (cin + cout) + 16 * cout)),
    )(xf, w1b, b1, w2f, b2f)

    # --- BN2 scale/shift from batch statistics (tiny XLA op) ------------------
    mean2 = s2 * inv_n
    var2 = jnp.maximum(q2 * inv_n - mean2 * mean2, 0.0)
    scale2 = g2 * lax.rsqrt(var2 + BN_EPS)
    shift2 = be2 - mean2 * scale2

    # --- pass C: normalize z (independent tiles -> "parallel") ----------------
    out = pl.pallas_call(
        _bn2_kernel,
        grid=grid,
        in_specs=[lane_tiled(cout), resident((cout, 1)), resident((cout, 1))],
        out_specs=lane_tiled(cout),
        out_shape=jax.ShapeDtypeStruct((cout, rows_p), jnp.float32),
        compiler_params=cp("parallel"),
        cost_estimate=pl.CostEstimate(
            flops=2 * rows_p * cout,
            transcendentals=0,
            bytes_accessed=6 * rows_p * cout + 8 * cout),
    )(z, scale2, shift2)

    out = out[:, :rows].reshape(cout, n, h, w)
    return jnp.transpose(out, (1, 0, 2, 3))  # back to NCHW


# ----------------------------------------------------------------------------
# Deterministic parameter init (mirrors nn.Conv2d(in,out,1) / nn.BatchNorm2d)
# ----------------------------------------------------------------------------
def init_double_conv(key, cin, cout):
    k1, k2, k3, k4 = jax.random.split(key, 4)
    s1 = 1.0 / jnp.sqrt(cin)
    s2 = 1.0 / jnp.sqrt(cout)
    w1 = jax.random.uniform(k1, (cout, cin), jnp.float32, -s1, s1)    # (out, in)
    b1 = jax.random.uniform(k2, (cout, 1), jnp.float32, -s1, s1)
    w2 = jax.random.uniform(k3, (cout, cout), jnp.float32, -s2, s2)
    b2 = jax.random.uniform(k4, (cout, 1), jnp.float32, -s2, s2)
    g1 = jnp.ones((cout, 1), jnp.float32)
    be1 = jnp.zeros((cout, 1), jnp.float32)
    g2 = jnp.ones((cout, 1), jnp.float32)
    be2 = jnp.zeros((cout, 1), jnp.float32)
    return (w1, b1, g1, be1, w2, b2, g2, be2)


# ----------------------------------------------------------------------------
# Pure-JAX reference (f32 throughout) for a numerical sanity check
# ----------------------------------------------------------------------------
def reference_double_conv(x_nchw, params):
    w1, b1, g1, be1, w2, b2, g2, be2 = params
    n, cin, h, w = x_nchw.shape
    cout = w1.shape[0]
    xf = jnp.transpose(x_nchw, (0, 2, 3, 1)).reshape(-1, cin).astype(jnp.float32)
    y = jnp.maximum(xf @ w1.T + b1[:, 0], 0.0)
    m1 = jnp.mean(y, axis=0)
    v1 = jnp.mean((y - m1) ** 2, axis=0)
    y = (y - m1) * lax.rsqrt(v1 + BN_EPS) * g1[:, 0] + be1[:, 0]
    z = jnp.maximum(y @ w2.T + b2[:, 0], 0.0)
    m2 = jnp.mean(z, axis=0)
    v2 = jnp.mean((z - m2) ** 2, axis=0)
    z = (z - m2) * lax.rsqrt(v2 + BN_EPS) * g2[:, 0] + be2[:, 0]
    return jnp.transpose(z.reshape(n, h, w, cout), (0, 3, 1, 2))


if __name__ == "__main__":
    key = jax.random.PRNGKey(0)
    kx, kp = jax.random.split(key)

    n, cin, h, w = 2, 4, 16, 16          # NCHW like PyTorch
    cout = 32
    x = jax.random.normal(kx, (n, cin, h, w), jnp.float32)
    params = init_double_conv(kp, cin, cout)

    # Small tile at toy size so the row grid / resident stat accumulation is
    # exercised (rows = 512 -> grid of 4); real FLAIR sizes use the 8192 default.
    fwd = jax.jit(functools.partial(double_conv_flair, tile_r=128))
    out = jax.block_until_ready(fwd(x, params))

    assert out.shape == (n, cout, h, w), out.shape
    assert bool(jnp.all(jnp.isfinite(out)))

    ref = reference_double_conv(x, params)
    max_err = float(jnp.max(jnp.abs(out - ref)))
    assert max_err < 0.15, f"max abs err vs f32 reference: {max_err}"

    print("KERNEL_OK")
</pallas_src>

<mosaic_0001>
module attributes {stable_mosaic.version = 11 : i64} {
  func.func @_conv1_conv2_stats_kernel(%arg0: i32, %arg1: memref<4x128xbf16, #tpu.memory_space<vmem>>, %arg2: memref<32x4xbf16, #tpu.memory_space<vmem>>, %arg3: memref<32x1xf32, #tpu.memory_space<vmem>>, %arg4: memref<32x32xbf16, #tpu.memory_space<vmem>>, %arg5: memref<32x1xf32, #tpu.memory_space<vmem>>, %arg6: memref<32x128xbf16, #tpu.memory_space<vmem>>, %arg7: memref<32x1xf32, #tpu.memory_space<vmem>>, %arg8: memref<32x1xf32, #tpu.memory_space<vmem>>) attributes {dimension_semantics = [#tpu.dimension_semantics<arbitrary>], iteration_bounds = array<i64: 4>, scalar_prefetch = 0 : i64, scratch_operands = 0 : i64, tpu.core_type = #tpu.core_type<tc>, window_params = [{transform_indices = @transform_0, window_bounds = array<i64: 4, 128>}, {pipeline_mode = #tpu.pipeline_mode<synchronous>, transform_indices = @transform_1, window_bounds = array<i64: 32, 4>}, {pipeline_mode = #tpu.pipeline_mode<synchronous>, transform_indices = @transform_2, window_bounds = array<i64: 32, 1>}, {pipeline_mode = #tpu.pipeline_mode<synchronous>, transform_indices = @transform_3, window_bounds = array<i64: 32, 32>}, {pipeline_mode = #tpu.pipeline_mode<synchronous>, transform_indices = @transform_4, window_bounds = array<i64: 32, 1>}, {transform_indices = @transform_5, window_bounds = array<i64: 32, 128>}, {pipeline_mode = #tpu.pipeline_mode<synchronous>, transform_indices = @transform_6, window_bounds = array<i64: 32, 1>}, {pipeline_mode = #tpu.pipeline_mode<synchronous>, transform_indices = @transform_7, window_bounds = array<i64: 32, 1>}]} {
    %c0_i32 = arith.constant 0 : i32
    %0 = arith.cmpi eq, %arg0, %c0_i32 : i32
    %1 = arith.extui %0 : i1 to i32
    %c0_i32_0 = arith.constant 0 : i32
    %2 = arith.cmpi ne, %1, %c0_i32_0 : i32
    scf.if %2 {
      %cst_18 = arith.constant 0.000000e+00 : f32
      %27 = vector.broadcast %cst_18 : f32 to vector<32x1xf32>
      %c0_19 = arith.constant 0 : index
      %c0_20 = arith.constant 0 : index
      %28 = vector.load %arg7[%c0_19, %c0_20] : memref<32x1xf32, #tpu.memory_space<vmem>>, vector<32x1xf32>
      tpu.vector_store %arg7[%c0_19, %c0_20], %27 {strides = array<i32>} : memref<32x1xf32, #tpu.memory_space<vmem>>, vector<32x1xf32>,
      %cst_21 = arith.constant 0.000000e+00 : f32
      %29 = vector.broadcast %cst_21 : f32 to vector<32x1xf32>
      %c0_22 = arith.constant 0 : index
      %c0_23 = arith.constant 0 : index
      %30 = vector.load %arg8[%c0_22, %c0_23] : memref<32x1xf32, #tpu.memory_space<vmem>>, vector<32x1xf32>
      tpu.vector_store %arg8[%c0_22, %c0_23], %29 {strides = array<i32>} : memref<32x1xf32, #tpu.memory_space<vmem>>, vector<32x1xf32>,
    } else {
    }
    %c0 = arith.constant 0 : index
    %c0_1 = arith.constant 0 : index
    %3 = vector.load %arg2[%c0, %c0_1] : memref<32x4xbf16, #tpu.memory_space<vmem>>, vector<32x4xbf16>
    %c0_2 = arith.constant 0 : index
    %c0_3 = arith.constant 0 : index
    %4 = vector.load %arg1[%c0_2, %c0_3] : memref<4x128xbf16, #tpu.memory_space<vmem>>, vector<4x128xbf16>
    %cst = arith.constant dense<0.000000e+00> : vector<32x128xf32>
    %5 = tpu.matmul %3, %4, %cst {dimension_numbers = #tpu.dot_dimension_numbers<[1], [0], [0], [1], [0, 0, 1, 1], [], []>} : vector<32x4xbf16>, vector<4x128xbf16>, vector<32x128xf32> -> vector<32x128xf32>
    %c0_4 = arith.constant 0 : index
    %c0_5 = arith.constant 0 : index
    %6 = vector.load %arg3[%c0_4, %c0_5] : memref<32x1xf32, #tpu.memory_space<vmem>>, vector<32x1xf32>
    %7 = vector.broadcast %6 : vector<32x1xf32> to vector<32x128xf32>
    %8 = arith.addf %5, %7 : vector<32x128xf32>
    %cst_6 = arith.constant 0.000000e+00 : f32
    %9 = vector.broadcast %cst_6 : f32 to vector<32x128xf32>
    %10 = arith.maximumf %8, %9 : vector<32x128xf32>
    %c0_7 = arith.constant 0 : index
    %c0_8 = arith.constant 0 : index
    %11 = vector.load %arg4[%c0_7, %c0_8] : memref<32x32xbf16, #tpu.memory_space<vmem>>, vector<32x32xbf16>
    %12 = arith.truncf %10 : vector<32x128xf32> to vector<32x128xbf16>
    %cst_9 = arith.constant dense<0.000000e+00> : vector<32x128xf32>
    %13 = tpu.matmul %11, %12, %cst_9 {dimension_numbers = #tpu.dot_dimension_numbers<[1], [0], [0], [1], [0, 0, 1, 1], [], []>} : vector<32x32xbf16>, vector<32x128xbf16>, vector<32x128xf32> -> vector<32x128xf32>
    %c0_10 = arith.constant 0 : index
    %c0_11 = arith.constant 0 : index
    %14 = vector.load %arg5[%c0_10, %c0_11] : memref<32x1xf32, #tpu.memory_space<vmem>>, vector<32x1xf32>
    %15 = vector.broadcast %14 : vector<32x1xf32> to vector<32x128xf32>
    %16 = arith.addf %13, %15 : vector<32x128xf32>
    %cst_12 = arith.constant 0.000000e+00 : f32
    %17 = vector.broadcast %cst_12 : f32 to vector<32x128xf32>
    %18 = arith.maximumf %16, %17 : vector<32x128xf32>
    %c3_i32 = arith.constant 3 : i32
    %19 = arith.cmpi ne, %arg0, %c3_i32 : i32
    %20 = arith.extui %19 : i1 to i32
    %c0_i32_13 = arith.constant 0 : i32
    %21 = arith.cmpi ne, %20, %c0_i32_13 : i32
    scf.if %21 {
      %c0_18 = arith.constant 0 : index
      %c0_19 = arith.constant 0 : index
      %27 = vector.load %arg7[%c0_18, %c0_19] : memref<32x1xf32, #tpu.memory_space<vmem>>, vector<32x1xf32>
      %cst_20 = arith.constant dense<0.000000e+00> : vector<32xf32>
      %28 = vector.multi_reduction <add>, %18, %cst_20 [1] : vector<32x128xf32> to vector<32xf32>
      %29 = vector.shape_cast %28 : vector<32xf32> to vector<32x1xf32>
      %30 = arith.addf %27, %29 : vector<32x1xf32>
      %c0_21 = arith.constant 0 : index
      %c0_22 = arith.constant 0 : index
      %31 = vector.load %arg7[%c0_21, %c0_22] : memref<32x1xf32, #tpu.memory_space<vmem>>, vector<32x1xf32>
      tpu.vector_store %arg7[%c0_21, %c0_22], %30 {strides = array<i32>} : memref<32x1xf32, #tpu.memory_space<vmem>>, vector<32x1xf32>,
      %c0_23 = arith.constant 0 : index
      %c0_24 = arith.constant 0 : index
      %32 = vector.load %arg8[%c0_23, %c0_24] : memref<32x1xf32, #tpu.memory_space<vmem>>, vector<32x1xf32>
      %33 = arith.mulf %18, %18 : vector<32x128xf32>
      %cst_25 = arith.constant dense<0.000000e+00> : vector<32xf32>
      %34 = vector.multi_reduction <add>, %33, %cst_25 [1] : vector<32x128xf32> to vector<32xf32>
      %35 = vector.shape_cast %34 : vector<32xf32> to vector<32x1xf32>
      %36 = arith.addf %32, %35 : vector<32x1xf32>
      %c0_26 = arith.constant 0 : index
      %c0_27 = arith.constant 0 : index
      %37 = vector.load %arg8[%c0_26, %c0_27] : memref<32x1xf32, #tpu.memory_space<vmem>>, vector<32x1xf32>
      tpu.vector_store %arg8[%c0_26, %c0_27], %36 {strides = array<i32>} : memref<32x1xf32, #tpu.memory_space<vmem>>, vector<32x1xf32>,
    } else {
    }
    %c3_i32_14 = arith.constant 3 : i32
    %22 = arith.cmpi eq, %arg0, %c3_i32_14 : i32
    %23 = arith.extui %22 : i1 to i32
    %c0_i32_15 = arith.constant 0 : i32
    %24 = arith.cmpi ne, %23, %c0_i32_15 : i32
    scf.if %24 {
      %27 = tpu.iota {dimensions = array<i32: 1>} : vector<32x128xi32>
      %c128_i32 = arith.constant 128 : i32
      %28 = arith.muli %arg0, %c128_i32 : i32
      %29 = vector.broadcast %28 : i32 to vector<32x128xi32>
      %30 = arith.addi %27, %29 : vector<32x128xi32>
      %c512_i32 = arith.constant 512 : i32
      %31 = vector.broadcast %c512_i32 : i32 to vector<32x128xi32>
      %32 = arith.cmpi slt, %30, %31 : vector<32x128xi32>
      %cst_18 = arith.constant 0.000000e+00 : f32
      %33 = vector.broadcast %cst_18 : f32 to vector<32x128xf32>
      %34 = arith.select %32, %18, %33 : vector<32x128xi1>, vector<32x128xf32>
      %c0_19 = arith.constant 0 : index
      %c0_20 = arith.constant 0 : index
      %35 = vector.load %arg7[%c0_19, %c0_20] : memref<32x1xf32, #tpu.memory_space<vmem>>, vector<32x1xf32>
      %cst_21 = arith.constant dense<0.000000e+00> : vector<32xf32>
      %36 = vector.multi_reduction <add>, %34, %cst_21 [1] : vector<32x128xf32> to vector<32xf32>
      %37 = vector.shape_cast %36 : vector<32xf32> to vector<32x1xf32>
      %38 = arith.addf %35, %37 : vector<32x1xf32>
      %c0_22 = arith.constant 0 : index
      %c0_23 = arith.constant 0 : index
      %39 = vector.load %arg7[%c0_22, %c0_23] : memref<32x1xf32, #tpu.memory_space<vmem>>, vector<32x1xf32>
      tpu.vector_store %arg7[%c0_22, %c0_23], %38 {strides = array<i32>} : memref<32x1xf32, #tpu.memory_space<vmem>>, vector<32x1xf32>,
      %c0_24 = arith.constant 0 : index
      %c0_25 = arith.constant 0 : index
      %40 = vector.load %arg8[%c0_24, %c0_25] : memref<32x1xf32, #tpu.memory_space<vmem>>, vector<32x1xf32>
      %41 = arith.mulf %34, %34 : vector<32x128xf32>
      %cst_26 = arith.constant dense<0.000000e+00> : vector<32xf32>
      %42 = vector.multi_reduction <add>, %41, %cst_26 [1] : vector<32x128xf32> to vector<32xf32>
      %43 = vector.shape_cast %42 : vector<32xf32> to vector<32x1xf32>
      %44 = arith.addf %40, %43 : vector<32x1xf32>
      %c0_27 = arith.constant 0 : index
      %c0_28 = arith.constant 0 : index
      %45 = vector.load %arg8[%c0_27, %c0_28] : memref<32x1xf32, #tpu.memory_space<vmem>>, vector<32x1xf32>
      tpu.vector_store %arg8[%c0_27, %c0_28], %44 {strides = array<i32>} : memref<32x1xf32, #tpu.memory_space<vmem>>, vector<32x1xf32>,
    } else {
    }
    %25 = arith.truncf %18 : vector<32x128xf32> to vector<32x128xbf16>
    %c0_16 = arith.constant 0 : index
    %c0_17 = arith.constant 0 : index
    %26 = vector.load %arg6[%c0_16, %c0_17] : memref<32x128xbf16, #tpu.memory_space<vmem>>, vector<32x128xbf16>
    tpu.vector_store %arg6[%c0_16, %c0_17], %25 {strides = array<i32>} : memref<32x128xbf16, #tpu.memory_space<vmem>>, vector<32x128xbf16>,
    return
  }
  func.func @transform_0(%arg0: i32) -> (i32, i32) {
    %c0_i32 = arith.constant 0 : i32
    %c0_i32_0 = arith.constant 0 : i32
    return %c0_i32, %arg0 : i32, i32
  }
  func.func @transform_1(%arg0: i32) -> (i32, i32) {
    %c0_i32 = arith.constant 0 : i32
    %c0_i32_0 = arith.constant 0 : i32
    %c0_i32_1 = arith.constant 0 : i32
    return %c0_i32, %c0_i32_0 : i32, i32
  }
  func.func @transform_2(%arg0: i32) -> (i32, i32) {
    %c0_i32 = arith.constant 0 : i32
    %c0_i32_0 = arith.constant 0 : i32
    %c0_i32_1 = arith.constant 0 : i32
    return %c0_i32, %c0_i32_0 : i32, i32
  }
  func.func @transform_3(%arg0: i32) -> (i32, i32) {
    %c0_i32 = arith.constant 0 : i32
    %c0_i32_0 = arith.constant 0 : i32
    %c0_i32_1 = arith.constant 0 : i32
    return %c0_i32, %c0_i32_0 : i32, i32
  }
  func.func @transform_4(%arg0: i32) -> (i32, i32) {
    %c0_i32 = arith.constant 0 : i32
    %c0_i32_0 = arith.constant 0 : i32
    %c0_i32_1 = arith.constant 0 : i32
    return %c0_i32, %c0_i32_0 : i32, i32
  }
  func.func @transform_5(%arg0: i32) -> (i32, i32) {
    %c0_i32 = arith.constant 0 : i32
    %c0_i32_0 = arith.constant 0 : i32
    return %c0_i32, %arg0 : i32, i32
  }
  func.func @transform_6(%arg0: i32) -> (i32, i32) {
    %c0_i32 = arith.constant 0 : i32
    %c0_i32_0 = arith.constant 0 : i32
    %c0_i32_1 = arith.constant 0 : i32
    return %c0_i32, %c0_i32_0 : i32, i32
  }
  func.func @transform_7(%arg0: i32) -> (i32, i32) {
    %c0_i32 = arith.constant 0 : i32
    %c0_i32_0 = arith.constant 0 : i32
    %c0_i32_1 = arith.constant 0 : i32
    return %c0_i32, %c0_i32_0 : i32, i32
  }
}

module attributes {stable_mosaic.version = 11 : i64} {
  func.func @_conv1_stats_kernel(%arg0: i32, %arg1: memref<4x128xbf16, #tpu.memory_space<vmem>>, %arg2: memref<32x4xbf16, #tpu.memory_space<vmem>>, %arg3: memref<32x1xf32, #tpu.memory_space<vmem>>, %arg4: memref<32x1xf32, #tpu.memory_space<vmem>>, %arg5: memref<32x1xf32, #tpu.memory_space<vmem>>) attributes {dimension_semantics = [#tpu.dimension_semantics<arbitrary>], iteration_bounds = array<i64: 4>, scalar_prefetch = 0 : i64, scratch_operands = 0 : i64, tpu.core_type = #tpu.core_type<tc>, window_params = [{transform_indices = @transform_0, window_bounds = array<i64: 4, 128>}, {pipeline_mode = #tpu.pipeline_mode<synchronous>, transform_indices = @transform_1, window_bounds = array<i64: 32, 4>}, {pipeline_mode = #tpu.pipeline_mode<synchronous>, transform_indices = @transform_2, window_bounds = array<i64: 32, 1>}, {pipeline_mode = #tpu.pipeline_mode<synchronous>, transform_indices = @transform_3, window_bounds = array<i64: 32, 1>}, {pipeline_mode = #tpu.pipeline_mode<synchronous>, transform_indices = @transform_4, window_bounds = array<i64: 32, 1>}]} {
    %c0_i32 = arith.constant 0 : i32
    %0 = arith.cmpi eq, %arg0, %c0_i32 : i32
    %1 = arith.extui %0 : i1 to i32
    %c0_i32_0 = arith.constant 0 : i32
    %2 = arith.cmpi ne, %1, %c0_i32_0 : i32
    scf.if %2 {
      %cst_10 = arith.constant 0.000000e+00 : f32
      %17 = vector.broadcast %cst_10 : f32 to vector<32x1xf32>
      %c0_11 = arith.constant 0 : index
      %c0_12 = arith.constant 0 : index
      %18 = vector.load %arg4[%c0_11, %c0_12] : memref<32x1xf32, #tpu.memory_space<vmem>>, vector<32x1xf32>
      tpu.vector_store %arg4[%c0_11, %c0_12], %17 {strides = array<i32>} : memref<32x1xf32, #tpu.memory_space<vmem>>, vector<32x1xf32>,
      %cst_13 = arith.constant 0.000000e+00 : f32
      %19 = vector.broadcast %cst_13 : f32 to vector<32x1xf32>
      %c0_14 = arith.constant 0 : index
      %c0_15 = arith.constant 0 : index
      %20 = vector.load %arg5[%c0_14, %c0_15] : memref<32x1xf32, #tpu.memory_space<vmem>>, vector<32x1xf32>
      tpu.vector_store %arg5[%c0_14, %c0_15], %19 {strides = array<i32>} : memref<32x1xf32, #tpu.memory_space<vmem>>, vector<32x1xf32>,
    } else {
    }
    %c0 = arith.constant 0 : index
    %c0_1 = arith.constant 0 : index
    %3 = vector.load %arg2[%c0, %c0_1] : memref<32x4xbf16, #tpu.memory_space<vmem>>, vector<32x4xbf16>
    %c0_2 = arith.constant 0 : index
    %c0_3 = arith.constant 0 : index
    %4 = vector.load %arg1[%c0_2, %c0_3] : memref<4x128xbf16, #tpu.memory_space<vmem>>, vector<4x128xbf16>
    %cst = arith.constant dense<0.000000e+00> : vector<32x128xf32>
    %5 = tpu.matmul %3, %4, %cst {dimension_numbers = #tpu.dot_dimension_numbers<[1], [0], [0], [1], [0, 0, 1, 1], [], []>} : vector<32x4xbf16>, vector<4x128xbf16>, vector<32x128xf32> -> vector<32x128xf32>
    %c0_4 = arith.constant 0 : index
    %c0_5 = arith.constant 0 : index
    %6 = vector.load %arg3[%c0_4, %c0_5] : memref<32x1xf32, #tpu.memory_space<vmem>>, vector<32x1xf32>
    %7 = vector.broadcast %6 : vector<32x1xf32> to vector<32x128xf32>
    %8 = arith.addf %5, %7 : vector<32x128xf32>
    %cst_6 = arith.constant 0.000000e+00 : f32
    %9 = vector.broadcast %cst_6 : f32 to vector<32x128xf32>
    %10 = arith.maximumf %8, %9 : vector<32x128xf32>
    %c3_i32 = arith.constant 3 : i32
    %11 = arith.cmpi ne, %arg0, %c3_i32 : i32
    %12 = arith.extui %11 : i1 to i32
    %c0_i32_7 = arith.constant 0 : i32
    %13 = arith.cmpi ne, %12, %c0_i32_7 : i32
    scf.if %13 {
      %c0_10 = arith.constant 0 : index
      %c0_11 = arith.constant 0 : index
      %17 = vector.load %arg4[%c0_10, %c0_11] : memref<32x1xf32, #tpu.memory_space<vmem>>, vector<32x1xf32>
      %cst_12 = arith.constant dense<0.000000e+00> : vector<32xf32>
      %18 = vector.multi_reduction <add>, %10, %cst_12 [1] : vector<32x128xf32> to vector<32xf32>
      %19 = vector.shape_cast %18 : vector<32xf32> to vector<32x1xf32>
      %20 = arith.addf %17, %19 : vector<32x1xf32>
      %c0_13 = arith.constant 0 : index
      %c0_14 = arith.constant 0 : index
      %21 = vector.load %arg4[%c0_13, %c0_14] : memref<32x1xf32, #tpu.memory_space<vmem>>, vector<32x1xf32>
      tpu.vector_store %arg4[%c0_13, %c0_14], %20 {strides = array<i32>} : memref<32x1xf32, #tpu.memory_space<vmem>>, vector<32x1xf32>,
      %c0_15 = arith.constant 0 : index
      %c0_16 = arith.constant 0 : index
      %22 = vector.load %arg5[%c0_15, %c0_16] : memref<32x1xf32, #tpu.memory_space<vmem>>, vector<32x1xf32>
      %23 = arith.mulf %10, %10 : vector<32x128xf32>
      %cst_17 = arith.constant dense<0.000000e+00> : vector<32xf32>
      %24 = vector.multi_reduction <add>, %23, %cst_17 [1] : vector<32x128xf32> to vector<32xf32>
      %25 = vector.shape_cast %24 : vector<32xf32> to vector<32x1xf32>
      %26 = arith.addf %22, %25 : vector<32x1xf32>
      %c0_18 = arith.constant 0 : index
      %c0_19 = arith.constant 0 : index
      %27 = vector.load %arg5[%c0_18, %c0_19] : memref<32x1xf32, #tpu.memory_space<vmem>>, vector<32x1xf32>
      tpu.vector_store %arg5[%c0_18, %c0_19], %26 {strides = array<i32>} : memref<32x1xf32, #tpu.memory_space<vmem>>, vector<32x1xf32>,
    } else {
    }
    %c3_i32_8 = arith.constant 3 : i32
    %14 = arith.cmpi eq, %arg0, %c3_i32_8 : i32
    %15 = arith.extui %14 : i1 to i32
    %c0_i32_9 = arith.constant 0 : i32
    %16 = arith.cmpi ne, %15, %c0_i32_9 : i32
    scf.if %16 {
      %17 = tpu.iota {dimensions = array<i32: 1>} : vector<32x128xi32>
      %c128_i32 = arith.constant 128 : i32
      %18 = arith.muli %arg0, %c128_i32 : i32
      %19 = vector.broadcast %18 : i32 to vector<32x128xi32>
      %20 = arith.addi %17, %19 : vector<32x128xi32>
      %c512_i32 = arith.constant 512 : i32
      %21 = vector.broadcast %c512_i32 : i32 to vector<32x128xi32>
      %22 = arith.cmpi slt, %20, %21 : vector<32x128xi32>
      %cst_10 = arith.constant 0.000000e+00 : f32
      %23 = vector.broadcast %cst_10 : f32 to vector<32x128xf32>
      %24 = arith.select %22, %10, %23 : vector<32x128xi1>, vector<32x128xf32>
      %c0_11 = arith.constant 0 : index
      %c0_12 = arith.constant 0 : index
      %25 = vector.load %arg4[%c0_11, %c0_12] : memref<32x1xf32, #tpu.memory_space<vmem>>, vector<32x1xf32>
      %cst_13 = arith.constant dense<0.000000e+00> : vector<32xf32>
      %26 = vector.multi_reduction <add>, %24, %cst_13 [1] : vector<32x128xf32> to vector<32xf32>
      %27 = vector.shape_cast %26 : vector<32xf32> to vector<32x1xf32>
      %28 = arith.addf %25, %27 : vector<32x1xf32>
      %c0_14 = arith.constant 0 : index
      %c0_15 = arith.constant 0 : index
      %29 = vector.load %arg4[%c0_14, %c0_15] : memref<32x1xf32, #tpu.memory_space<vmem>>, vector<32x1xf32>
      tpu.vector_store %arg4[%c0_14, %c0_15], %28 {strides = array<i32>} : memref<32x1xf32, #tpu.memory_space<vmem>>, vector<32x1xf32>,
      %c0_16 = arith.constant 0 : index
      %c0_17 = arith.constant 0 : index
      %30 = vector.load %arg5[%c0_16, %c0_17] : memref<32x1xf32, #tpu.memory_space<vmem>>, vector<32x1xf32>
      %31 = arith.mulf %24, %24 : vector<32x128xf32>
      %cst_18 = arith.constant dense<0.000000e+00> : vector<32xf32>
      %32 = vector.multi_reduction <add>, %31, %cst_18 [1] : vector<32x128xf32> to vector<32xf32>
      %33 = vector.shape_cast %32 : vector<32xf32> to vector<32x1xf32>
      %34 = arith.addf %30, %33 : vector<32x1xf32>
      %c0_19 = arith.constant 0 : index
      %c0_20 = arith.constant 0 : index
      %35 = vector.load %arg5[%c0_19, %c0_20] : memref<32x1xf32, #tpu.memory_space<vmem>>, vector<32x1xf32>
      tpu.vector_store %arg5[%c0_19, %c0_20], %34 {strides = array<i32>} : memref<32x1xf32, #tpu.memory_space<vmem>>, vector<32x1xf32>,
    } else {
    }
    return
  }
  func.func @transform_0(%arg0: i32) -> (i32, i32) {
    %c0_i32 = arith.constant 0 : i32
    %c0_i32_0 = arith.constant 0 : i32
    return %c0_i32, %arg0 : i32, i32
  }
  func.func @transform_1(%arg0: i32) -> (i32, i32) {
    %c0_i32 = arith.constant 0 : i32
    %c0_i32_0 = arith.constant 0 : i32
    %c0_i32_1 = arith.constant 0 : i32
    return %c0_i32, %c0_i32_0 : i32, i32
  }
  func.func @transform_2(%arg0: i32) -> (i32, i32) {
    %c0_i32 = arith.constant 0 : i32
    %c0_i32_0 = arith.constant 0 : i32
    %c0_i32_1 = arith.constant 0 : i32
    return %c0_i32, %c0_i32_0 : i32, i32
  }
  func.func @transform_3(%arg0: i32) -> (i32, i32) {
    %c0_i32 = arith.constant 0 : i32
    %c0_i32_0 = arith.constant 0 : i32
    %c0_i32_1 = arith.constant 0 : i32
    return %c0_i32, %c0_i32_0 : i32, i32
  }
  func.func @transform_4(%arg0: i32) -> (i32, i32) {
    %c0_i32 = arith.constant 0 : i32
    %c0_i32_0 = arith.constant 0 : i32
    %c0_i32_1 = arith.constant 0 : i32
    return %c0_i32, %c0_i32_0 : i32, i32
  }
}

module attributes {stable_mosaic.version = 11 : i64} {
  func.func @_bn2_kernel(%arg0: i32, %arg1: memref<32x128xbf16, #tpu.memory_space<vmem>>, %arg2: memref<32x1xf32, #tpu.memory_space<vmem>>, %arg3: memref<32x1xf32, #tpu.memory_space<vmem>>, %arg4: memref<32x128xf32, #tpu.memory_space<vmem>>) attributes {dimension_semantics = [#tpu.dimension_semantics<parallel>], iteration_bounds = array<i64: 4>, scalar_prefetch = 0 : i64, scratch_operands = 0 : i64, tpu.core_type = #tpu.core_type<tc>, window_params = [{transform_indices = @transform_0, window_bounds = array<i64: 32, 128>}, {pipeline_mode = #tpu.pipeline_mode<synchronous>, transform_indices = @transform_1, window_bounds = array<i64: 32, 1>}, {pipeline_mode = #tpu.pipeline_mode<synchronous>, transform_indices = @transform_2, window_bounds = array<i64: 32, 1>}, {transform_indices = @transform_3, window_bounds = array<i64: 32, 128>}]} {
    %c0 = arith.constant 0 : index
    %c0_0 = arith.constant 0 : index
    %0 = vector.load %arg1[%c0, %c0_0] : memref<32x128xbf16, #tpu.memory_space<vmem>>, vector<32x128xbf16>
    %1 = arith.extf %0 : vector<32x128xbf16> to vector<32x128xf32>
    %c0_1 = arith.constant 0 : index
    %c0_2 = arith.constant 0 : index
    %2 = vector.load %arg2[%c0_1, %c0_2] : memref<32x1xf32, #tpu.memory_space<vmem>>, vector<32x1xf32>
    %3 = vector.broadcast %2 : vector<32x1xf32> to vector<32x128xf32>
    %4 = arith.mulf %1, %3 : vector<32x128xf32>
    %c0_3 = arith.constant 0 : index
    %c0_4 = arith.constant 0 : index
    %5 = vector.load %arg3[%c0_3, %c0_4] : memref<32x1xf32, #tpu.memory_space<vmem>>, vector<32x1xf32>
    %6 = vector.broadcast %5 : vector<32x1xf32> to vector<32x128xf32>
    %7 = arith.addf %4, %6 : vector<32x128xf32>
    %c0_5 = arith.constant 0 : index
    %c0_6 = arith.constant 0 : index
    %8 = vector.load %arg4[%c0_5, %c0_6] : memref<32x128xf32, #tpu.memory_space<vmem>>, vector<32x128xf32>
    tpu.vector_store %arg4[%c0_5, %c0_6], %7 {strides = array<i32>} : memref<32x128xf32, #tpu.memory_space<vmem>>, vector<32x128xf32>,
    return
  }
  func.func @transform_0(%arg0: i32) -> (i32, i32) {
    %c0_i32 = arith.constant 0 : i32
    %c0_i32_0 = arith.constant 0 : i32
    return %c0_i32, %arg0 : i32, i32
  }
  func.func @transform_1(%arg0: i32) -> (i32, i32) {
    %c0_i32 = arith.constant 0 : i32
    %c0_i32_0 = arith.constant 0 : i32
    %c0_i32_1 = arith.constant 0 : i32
    return %c0_i32, %c0_i32_0 : i32, i32
  }
  func.func @transform_2(%arg0: i32) -> (i32, i32) {
    %c0_i32 = arith.constant 0 : i32
    %c0_i32_0 = arith.constant 0 : i32
    %c0_i32_1 = arith.constant 0 : i32
    return %c0_i32, %c0_i32_0 : i32, i32
  }
  func.func @transform_3(%arg0: i32) -> (i32, i32) {
    %c0_i32 = arith.constant 0 : i32
    %c0_i32_0 = arith.constant 0 : i32
    return %c0_i32, %arg0 : i32, i32
  }
}

</mosaic_0001>

<bundles_post_ra>
// kernel: double_conv_flair.5
= control target key start
LH: loop header
LB: loop body
LE: loop exit
PB: predicated region body
PF: predicated region fallthrough
CT: control target
= control target key end

     0   :  { %s492_s12 = smov 0   ;;  %s494_s13 = smov 0   ;;  %s576_s0 = inlined_call_operand.vmem [shape: bf16[32,512], index: 0, kind: input, shape index: {}]   ;;  %s577_s1 = inlined_call_operand.vmem [shape: f32[32,1], index: 1, kind: input, shape index: {}]   ;;  %s578_s2 = inlined_call_operand.vmem [shape: f32[32,1], index: 2, kind: input, shape index: {}]   ;;  %s579_s3 = inlined_call_operand.vmem [shape: f32[32,512], index: 3, kind: output, shape index: {}]  }
   0x1   :  { %s496_s14 = smov 0  }
   0x2 LB: > { %s398_s15 = sadd.s32 4294967295, %s469_s14   ;;  %s509_s16 = sadd.s32 1, %s469_s14   ;;  %s469_s14 = sphi %s496_s14, %s583_s14   ;;  %s465_s13 = sphi %s494_s13, %s582_s13   ;;  %s461_s12 = sphi %s492_s12, %s581_s12  }
   0x3   : > { %s17_s17 = ssub.s32 %s469_s14, %s509_s16  ;;  %s20_s18 = sadd.s32 1, %s465_s13 }
   0x4   : > { %p18_p0 = scmp.eq.s32.totalorder %s17_s17, 0  ;;  %p27_p1 = scmp.ne.s32.totalorder %s465_s13, %s461_s12 }
   0x5   : > { %p28_p2 = scmp.eq.s32.totalorder %s469_s14, 0  ;;  %p99_p3 = scmp.eq.s32.totalorder %s398_s15, 3 }
   0x6   : > { %s520_s19 = scalar_select %p18_p0, %s465_s13, %s20_s18  }
   0x7   : > { %p29_p4 = por %p28_p2, %p27_p1  ;;  %p522_p5 = por %p99_p3, %p27_p1 }
   0x8   : > { %p401_p6 = scmp.ge.s32.totalorder %s469_s14, 4 }
   0xa   : > { %127 = sbr.rel (%p401_p6) target bundleno = 22 (0x16), region = 24 }
   0xf   : > { %130 = sbr.rel (!%p29_p4) target bundleno = 22 (0x16), region = 28  ;;  %s132_s21 = sand.u32 (%p29_p4), 1, %s465_s13  }
  0x10   : > { %s403_s22 = sshll.u32 (%p29_p4), %s469_s14, 2  ;;  %s402_s23 = sshll.u32 (%p29_p4), %s132_s21, 4 }
  0x11   : > { %s136_s26 = scalar_lea.vmem (%p29_p4), %s576_s0, %s403_s22  ;;  %s134_s27 = scalar_lea.vmem (%p29_p4), [#allocation2], %s402_s23 }
  0x12   : > { %v153_v0 = vld [vmem:[%s136_s26] sm:$0xf] (%p29_p4)  ;;  %v155_v1 = vld [vmem:[%s136_s26 + $0x10] sm:$0xf] (%p29_p4) }
  0x13   : > { %154 = vst [vmem:[%s134_s27] sm:$0xf] (%p29_p4), %v153_v0  ;;  %156 = vst [vmem:[%s134_s27 + $0x4] sm:$0xf] (%p29_p4), %v155_v1  ;;  %v157_v2 = vld [vmem:[%s136_s26 + $0x20] sm:$0xf] (%p29_p4) }
  0x14   : > { %v159_v3 = vld [vmem:[%s136_s26 + $0x30] sm:$0xf]  ;;  %158 = vst [vmem:[%s134_s27 + $0x8] sm:$0xf] %v157_v2 }
  0x15   : > { %160 = vst [vmem:[%s134_s27 + $0xc] sm:$0xf] %v159_v3 }
  0x16 PF: > { %p404_p7 = scmp.ge.s32.totalorder %s469_s14, 1  ;;  %p191_p8 = scmp.lt.s32.totalorder %s469_s14, 5 }
  0x18   : > { %p192_p9 = pnand %p404_p7, %p191_p8 }
  0x19   : > { %s198_s24 = sand.u32 (!%p192_p9), 1, %s461_s12  }
  0x1a   : > { %195 = sbr.rel (%p192_p9) target bundleno = 180 (0xb4), region = 69  ;;  %s405_s25 = sshll.u32 (!%p192_p9), %s198_s24, 4 }
  0x1b   : > { %s200_s26 = scalar_lea.vmem (!%p192_p9), [#allocation2], %s405_s25  ;;  %s406_s27 = sshll.u32 (!%p192_p9), %s198_s24, 5 }
  0x1c   : > { %s219_s12 = scalar_lea.vmem (!%p192_p9), [#allocation3], %s406_s27 }
  0x1f   : > { %v230_v4 = vld [vmem:[%s577_s1 + $0x10] sm:$0xff]  ;;  %v228_v5 = vld [vmem:[%s577_s1] sm:$0xff]  ;;  %v471_v6 = vmov 0   ;;  %v231_v7 = vld [vmem:[%s577_s1 + $0x18] sm:$0xff]  ;;  %s408_s28 = sshll.u32 (%p522_p5), %s398_s15, 3 }
  0x20   : > { %446 = vset.pattern.permute.xlu1 %v471_v6  ;;  %445 = vset.pattern.permute.xlu0 %v471_v6  ;;  %v229_v8 = vld [vmem:[%s577_s1 + $0x8] sm:$0xff]  ;;  %v256_v10 = vld [vmem:[%s578_s2] sm:$0xff]  ;;  %v259_v11 = vld [vmem:[%s578_s2 + $0x18] sm:$0xff]  ;;  %s296_s4 = scalar_lea.vmem (%p522_p5), %s579_s3, %s408_s28 }
  0x21   : > { %244 = vperm.xlu1 %446, %v230_v4   ;;  %234 = vperm.xlu0 %445, %v228_v5   ;;  %v257_v9 = vld [vmem:[%s578_s2 + $0x8] sm:$0xff]  ;;  %v258_v12 = vld [vmem:[%s578_s2 + $0x10] sm:$0xff] }
  0x22   : > { %v412_v15 = vld [vmem:[%s200_s26] sm:$0xff]   ;;  %v419_v18 = vld [vmem:[%s200_s26 + $0x8] sm:$0xff]  }
  0x23   : > { %v413_v16 = vunpack.c.l.bf16 %v412_v15  ;;  %v414_v17 = vunpack.c.h.bf16 %v412_v15  ;;  %v417_v21 = vunpack.c.l.bf16 %v419_v18  ;;  %v418_v23 = vunpack.c.h.bf16 %v419_v18 }
  0x25   : > { %249 = vperm.xlu1 %446, %v231_v7   ;;  %239 = vperm.xlu0 %445, %v229_v8  }
  0x29   : > { %267 = vperm.xlu1 %446, %v257_v9   ;;  %262 = vperm.xlu0 %445, %v256_v10  }
  0x2d   : > { %277 = vperm.xlu1 %446, %v259_v11   ;;  %272 = vperm.xlu0 %445, %v258_v12  }
  0x9c   : > { %v245_v13 = vpop.permute.xlu1 %244  ;;  %v235_v14 = vpop.permute.xlu0 %234 }
  0x9d   : > { %v252_v22 = vmul.f32 %v413_v16, %v235_v14  ;;  %v254_v29 = vmul.f32 %v417_v21, %v245_v13 }
  0xa0   : > { %v250_v19 = vpop.permute.xlu1 %249  ;;  %v240_v20 = vpop.permute.xlu0 %239 }
  0xa1   : > { %v253_v24 = vmul.f32 %v414_v17, %v240_v20  ;;  %v255_v30 = vmul.f32 %v418_v23, %v250_v19 }
  0xa4   : > { %v268_v25 = vpop.permute.xlu1 %267  ;;  %v263_v26 = vpop.permute.xlu0 %262 }
  0xa5   : > { %v281_v27 = vadd.f32 %v268_v25, %v253_v24  ;;  %v280_v28 = vadd.f32 %v263_v26, %v252_v22 }
  0xa7   : > { %285 = vst [vmem:[%s219_s12 + $0x8] sm:$0xff] %v281_v27  ;;  %284 = vst [vmem:[%s219_s12] sm:$0xff] %v280_v28  ;;  %294 = sbr.rel (!%p522_p5) target bundleno = 180 (0xb4), region = 77 }
  0xa8   : > { %v278_v31 = vpop.permute.xlu1 %277  ;;  %v273_v32 = vpop.permute.xlu0 %272 }
  0xa9   : > { %v283_v33 = vadd.f32 %v278_v31, %v255_v30  ;;  %v282_v34 = vadd.f32 %v273_v32, %v254_v29 }
  0xab   : > { %287 = vst [vmem:[%s219_s12 + $0x18] sm:$0xff] %v283_v33  ;;  %286 = vst [vmem:[%s219_s12 + $0x10] sm:$0xff] %v282_v34 }
  0xae   : > { %v331_v35 = vld [vmem:[%s219_s12] sm:$0xff]  ;;  %v333_v36 = vld [vmem:[%s219_s12 + $0x8] sm:$0xff] }
  0xaf   : > { %332 = vst [vmem:[%s296_s4] sm:$0xff] %v331_v35  ;;  %334 = vst [vmem:[%s296_s4 + $0x20] sm:$0xff] %v333_v36 }
  0xb2   : > { %v335_v37 = vld [vmem:[%s219_s12 + $0x10] sm:$0xff]  ;;  %v337_v38 = vld [vmem:[%s219_s12 + $0x18] sm:$0xff] }
  0xb3   : > { %336 = vst [vmem:[%s296_s4 + $0x40] sm:$0xff] %v335_v37  ;;  %338 = vst [vmem:[%s296_s4 + $0x60] sm:$0xff] %v337_v38 }
  0xb4 PF: > { %p10_p10 = scmp.ge.s32.totalorder %s509_s16, 6   ;;  %s581_s12 = smov %s465_s13 }
  0xb5   : > { %s582_s13 = smov %s520_s19  ;;  %s583_s14 = smov %s509_s16 }
  0xb6   :  { %12 = sbr.rel (!%p10_p10) target bundleno = 2 (0x2), region = 146 }

// kernel: double_conv_flair.3
= control target key start
LH: loop header
LB: loop body
LE: loop exit
PB: predicated region body
PF: predicated region fallthrough
CT: control target
= control target key end

     0   :  { %s511_s15 = smov 0   ;;  %s705_s0 = inlined_call_operand.vmem [shape: bf16[4,512], index: 0, kind: input, shape index: {}]   ;;  %s706_s1 = inlined_call_operand.vmem [shape: bf16[32,4], index: 1, kind: input, shape index: {}]   ;;  %s707_s2 = inlined_call_operand.vmem [shape: f32[32,1], index: 2, kind: input, shape index: {}]   ;;  %s708_s3 = inlined_call_operand.vmem [shape: f32[32,1], index: 3, kind: output, shape index: {0}]   ;;  %s709_s4 = inlined_call_operand.vmem [shape: f32[32,1], index: 4, kind: output, shape index: {1}]  }
   0x1 LB: > { %s517_s16 = sadd.s32 4294967295, %s482_s15   ;;  %p440_p0 = scmp.ge.s32.totalorder %s482_s15, 1  ;;  %s482_s15 = sphi %s511_s15, %s15_s15  }
   0x2   : > { %p154_p1 = scmp.lt.s32.totalorder %s482_s15, 5 }
   0x4   : > { %p155_p2 = pnand %p440_p0, %p154_p1 }
   0x5   : > { %p174_p3 = scmp.lt.s32.totalorder (!%p155_p2), %s517_s16, 3  ;;  %p442_p4 = scmp.ne.s32.totalorder (!%p155_p2), %s517_s16, 0 }
   0x6   : > { %158 = sbr.rel (%p155_p2) target bundleno = 550 (0x226), region = 32 }
   0xb   : > { %s175_s17 = scalar_select %p174_p3, %s517_s16, 3 }
   0xc   : > { %182 = sbr.rel (%p442_p4) target bundleno = 22 (0x16), region = 36 }
   0xd   : > { %s441_s18 = sshll.u32 %s175_s17, 1 }
   0xe   : > { %s177_s21 = scalar_lea.vmem %s705_s0, %s441_s18 }
  0x11   : > { %vm183_vm0 = vcmask 7168   ;;  %v484_v0 = vmov 0.0  }
  0x12   : > { %184 = vst.msk [vmem:[%s708_s3] sm:$0xff] %vm183_vm0, %v484_v0  ;;  %185 = vst.msk [vmem:[%s708_s3 + $0x8] sm:$0xff] %vm183_vm0, %v484_v0 }
  0x13   : > { %186 = vst.msk [vmem:[%s708_s3 + $0x10] sm:$0xff] %vm183_vm0, %v484_v0  ;;  %187 = vst.msk [vmem:[%s708_s3 + $0x18] sm:$0xff] %vm183_vm0, %v484_v0 }
  0x14   : > { %188 = vst.msk [vmem:[%s709_s4] sm:$0xff] %vm183_vm0, %v484_v0  ;;  %189 = vst.msk [vmem:[%s709_s4 + $0x8] sm:$0xff] %vm183_vm0, %v484_v0 }
  0x15   : > { %190 = vst.msk [vmem:[%s709_s4 + $0x10] sm:$0xff] %vm183_vm0, %v484_v0  ;;  %191 = vst.msk [vmem:[%s709_s4 + $0x18] sm:$0xff] %vm183_vm0, %v484_v0 }
  0x16 PF: > { %v196_v1 = vld [vmem:[%s177_s21] sm:$0x3]  ;;  %vm238_vm1 = vcmask 1041408   ;;  %vm231_vm2 = vcmask 31744   ;;  %v475_v4 = vld [vmem:[%s706_s1 + $0x8] sm:$0xff]   ;;  %v199_v5 = vld [vmem:[%s707_s2 + $0x10] sm:$0xff] }
  0x17   : > { %v474_v2 = vld [vmem:[%s706_s1] sm:$0xff]   ;;  %461 = vmatprep.subr.msk.bf16.mxu0 %vm238_vm1, %v196_v1  ;;  %v240_v3 = vsel %vm238_vm1, %v196_v1, 0  ;;  %v485_v6 = vmov 0   ;;  %v200_v8 = vld [vmem:[%s707_s2 + $0x18] sm:$0xff]  ;;  %v198_v9 = vld [vmem:[%s707_s2 + $0x8] sm:$0xff]  ;;  %p447_p5 = scmp.eq.s32.totalorder %s517_s16, 3 }
  0x18   : > { %456 = vmatpush3.bf16.msra.mxu0 %v240_v3  ;;  %457 = vmatprep.mubr.msk.bf16.mxu0 %vm231_vm2, %v474_v2  ;;  %v197_v7 = vld [vmem:[%s707_s2] sm:$0xff] }
  0x19   : > { %473 = vset.pattern.permute.xlu1 %v485_v6  ;;  %472 = vset.pattern.permute.xlu0 %v485_v6 }
  0x1a   : > { %213 = vperm.xlu1 %473, %v199_v5   ;;  %203 = vperm.xlu0 %472, %v197_v7  }
  0x1b   : > { %458 = vmatmul.mubr.msk.bf16.vlgmr.msra.gmra.mxu0 %vm231_vm2, %v475_v4 }
  0x1e   : > { %218 = vperm.xlu1 %473, %v200_v8   ;;  %208 = vperm.xlu0 %472, %v198_v9  }
  0x95   : > { %v214_v10 = vpop.permute.xlu1 %213  ;;  %v204_v11 = vpop.permute.xlu0 %203 }
  0x99   : > { %v219_v17 = vpop.permute.xlu1 %218  ;;  %v209_v21 = vpop.permute.xlu0 %208 }
  0xdb   : > { %v459_v12 = vpop.f32.mrf.mxu0 }
  0xdc   : > { %v285_v13 = vadd.f32 %v459_v12, %v214_v10 }
  0xdd   : > { %v276_v14 = vpop.f32.mrf.mxu0 }
  0xde   : > { %v569_v15 = vmax.f32 %v285_v13, 0.0  ;;  %v277_v16 = vadd.f32 %v276_v14, %v204_v11 }
  0xdf   : > { %v460_v18 = vpop.f32.mrf.mxu0 }
  0xe0   : > { %v571_v19 = vmax.f32 %v277_v16, 0.0  ;;  %v288_v20 = vadd.f32 %v460_v18, %v219_v17  ;;  %298 = sbr.rel (%p447_p5) target bundleno = 382 (0x17e), region = 40 }
  0xe1   : > { %v279_v22 = vpop.f32.mrf.mxu0 }
  0xe2   : > { %v573_v23 = vmax.f32 %v288_v20, 0.0  ;;  %v280_v24 = vadd.f32 %v279_v22, %v209_v21 }
  0xe4   : > { %v292_v25 = vmax.f32 %v280_v24, 0.0 }
  0xe5   : > { %307 = vadd.xlane.f32.xlu1 %v569_v15  ;;  %303 = vadd.xlane.f32.xlu0 %v571_v19  ;;  %v324_v27 = vmul.f32 %v571_v19, %v571_v19  ;;  %v327_v28 = vmul.f32 %v573_v23, %v573_v23  ;;  %v326_v29 = vmul.f32 %v569_v15, %v569_v15  ;;  %v301_v30 = vld [vmem:[%s708_s3 + $0x10] sm:$0xff]  ;;  %v299_v31 = vld [vmem:[%s708_s3] sm:$0xff]  ;;  %vm315_vm3 = vcmask 7168   ;;  %v302_v36 = vld [vmem:[%s708_s3 + $0x18] sm:$0xff] }
  0xe6   : > { %v325_v26 = vmul.f32 %v292_v25, %v292_v25  ;;  %v300_v37 = vld [vmem:[%s708_s3 + $0x8] sm:$0xff]  ;;  %v320_v43 = vld [vmem:[%s709_s4] sm:$0xff]  ;;  %v323_v48 = vld [vmem:[%s709_s4 + $0x18] sm:$0xff] }
  0xe7   : > { %v321_v42 = vld [vmem:[%s709_s4 + $0x8] sm:$0xff]  ;;  %v322_v49 = vld [vmem:[%s709_s4 + $0x10] sm:$0xff] }
  0xe9   : > { %309 = vadd.xlane.f32.xlu1 %v573_v23  ;;  %305 = vadd.xlane.f32.xlu0 %v292_v25 }
  0xed   : > { %330 = vadd.xlane.f32.xlu1 %v325_v26  ;;  %328 = vadd.xlane.f32.xlu0 %v324_v27 }
  0xf1   : > { %334 = vadd.xlane.f32.xlu1 %v327_v28  ;;  %332 = vadd.xlane.f32.xlu0 %v326_v29 }
 0x16e   : > { %v308_v32 = vpop.xlane.xlu1 %307  ;;  %v304_v33 = vpop.xlane.xlu0 %303 }
 0x16f   : > { %v313_v34 = vadd.f32 %v308_v32, %v301_v30  ;;  %v311_v35 = vadd.f32 %v304_v33, %v299_v31 }
 0x171   : > { %318 = vst.msk [vmem:[%s708_s3 + $0x10] sm:$0xff] %vm315_vm3, %v313_v34  ;;  %316 = vst.msk [vmem:[%s708_s3] sm:$0xff] %vm315_vm3, %v311_v35 }
 0x172   : > { %v310_v38 = vpop.xlane.xlu1 %309  ;;  %v306_v39 = vpop.xlane.xlu0 %305 }
 0x173   : > { %v314_v40 = vadd.f32 %v310_v38, %v302_v36  ;;  %v312_v41 = vadd.f32 %v306_v39, %v300_v37 }
 0x175   : > { %319 = vst.msk [vmem:[%s708_s3 + $0x18] sm:$0xff] %vm315_vm3, %v314_v40  ;;  %317 = vst.msk [vmem:[%s708_s3 + $0x8] sm:$0xff] %vm315_vm3, %v312_v41 }
 0x176   : > { %v331_v44 = vpop.xlane.xlu1 %330  ;;  %v329_v45 = vpop.xlane.xlu0 %328 }
 0x177   : > { %v337_v46 = vadd.f32 %v331_v44, %v321_v42  ;;  %v336_v47 = vadd.f32 %v329_v45, %v320_v43 }
 0x179   : > { %341 = vst.msk [vmem:[%s709_s4 + $0x8] sm:$0xff] %vm315_vm3, %v337_v46  ;;  %340 = vst.msk [vmem:[%s709_s4] sm:$0xff] %vm315_vm3, %v336_v47 }
 0x17a   : > { %v335_v50 = vpop.xlane.xlu1 %334  ;;  %v333_v51 = vpop.xlane.xlu0 %332 }
 0x17b   : > { %v339_v52 = vadd.f32 %v335_v50, %v323_v48  ;;  %v338_v53 = vadd.f32 %v333_v51, %v322_v49 }
 0x17d   : > { %343 = vst.msk [vmem:[%s709_s4 + $0x18] sm:$0xff] %vm315_vm3, %v339_v52  ;;  %342 = vst.msk [vmem:[%s709_s4 + $0x10] sm:$0xff] %vm315_vm3, %v338_v53 }
 0x17e PF: > { %p448_p6 = scmp.ne.s32.totalorder %s517_s16, 3 }
 0x17f   : > { %s449_s8 = sshll.u32 (!%p448_p6), %s517_s16, 7 }
 0x180   : > { %347 = sbr.rel (%p448_p6) target bundleno = 550 (0x226), region = 44 }
 0x185   : > { %v348_v54 = vlaneseq  ;;  %v351_v55 = vstv %s449_s8  ;;  %v360_v2 = vld [vmem:[%s708_s3 + $0x10] sm:$0xff]  ;;  %v358_v3 = vld [vmem:[%s708_s3] sm:$0xff]  ;;  %vm374_vm5 = vcmask 7168   ;;  %v361_v8 = vld [vmem:[%s708_s3 + $0x18] sm:$0xff] }
 0x186   : > { %v359_v9 = vld [vmem:[%s708_s3 + $0x8] sm:$0xff]  ;;  %v382_v20 = vld [vmem:[%s709_s4 + $0x18] sm:$0xff]  ;;  %v381_v21 = vld [vmem:[%s709_s4 + $0x10] sm:$0xff] }
 0x187   : > { %v349_v56 = vand.u32 127, %v348_v54  ;;  %v380_v14 = vld [vmem:[%s709_s4 + $0x8] sm:$0xff] }
 0x189   : > { %v352_v57 = vadd.s32 %v351_v55, %v349_v56 }
 0x18b   : > { %vm353_vm4 = vcmp.lt.s32.totalorder %v352_v57, 512 }
 0x18c   : > { %v356_v58 = vsel %vm353_vm4, %v569_v15, 0.0  ;;  %v354_v59 = vsel %vm353_vm4, %v571_v19, 0.0  ;;  %v357_v60 = vsel %vm353_vm4, %v573_v23, 0.0  ;;  %v355_v61 = vsel %vm353_vm4, %v292_v25, 0.0  ;;  %v379_v15 = vld [vmem:[%s709_s4] sm:$0xff] }
 0x18d   : > { %366 = vadd.xlane.f32.xlu1 %v356_v58  ;;  %362 = vadd.xlane.f32.xlu0 %v354_v59  ;;  %v384_v62 = vmul.f32 %v355_v61, %v355_v61  ;;  %v383_v63 = vmul.f32 %v354_v59, %v354_v59  ;;  %v386_v0 = vmul.f32 %v357_v60, %v357_v60 }
 0x18e   : > { %v385_v1 = vmul.f32 %v356_v58, %v356_v58 }
 0x191   : > { %368 = vadd.xlane.f32.xlu1 %v357_v60  ;;  %364 = vadd.xlane.f32.xlu0 %v355_v61 }
 0x195   : > { %389 = vadd.xlane.f32.xlu1 %v384_v62  ;;  %387 = vadd.xlane.f32.xlu0 %v383_v63 }
 0x199   : > { %393 = vadd.xlane.f32.xlu1 %v386_v0  ;;  %391 = vadd.xlane.f32.xlu0 %v385_v1 }
 0x216   : > { %v367_v4 = vpop.xlane.xlu1 %366  ;;  %v363_v5 = vpop.xlane.xlu0 %362 }
 0x217   : > { %v372_v6 = vadd.f32 %v367_v4, %v360_v2  ;;  %v370_v7 = vadd.f32 %v363_v5, %v358_v3 }
 0x219   : > { %377 = vst.msk [vmem:[%s708_s3 + $0x10] sm:$0xff] %vm374_vm5, %v372_v6  ;;  %375 = vst.msk [vmem:[%s708_s3] sm:$0xff] %vm374_vm5, %v370_v7 }
 0x21a   : > { %v369_v10 = vpop.xlane.xlu1 %368  ;;  %v365_v11 = vpop.xlane.xlu0 %364 }
 0x21b   : > { %v373_v12 = vadd.f32 %v369_v10, %v361_v8  ;;  %v371_v13 = vadd.f32 %v365_v11, %v359_v9 }
 0x21d   : > { %378 = vst.msk [vmem:[%s708_s3 + $0x18] sm:$0xff] %vm374_vm5, %v373_v12  ;;  %376 = vst.msk [vmem:[%s708_s3 + $0x8] sm:$0xff] %vm374_vm5, %v371_v13 }
 0x21e   : > { %v390_v16 = vpop.xlane.xlu1 %389  ;;  %v388_v17 = vpop.xlane.xlu0 %387 }
 0x21f   : > { %v396_v18 = vadd.f32 %v390_v16, %v380_v14  ;;  %v395_v19 = vadd.f32 %v388_v17, %v379_v15 }
 0x221   : > { %400 = vst.msk [vmem:[%s709_s4 + $0x8] sm:$0xff] %vm374_vm5, %v396_v18  ;;  %399 = vst.msk [vmem:[%s709_s4] sm:$0xff] %vm374_vm5, %v395_v19 }
 0x222   : > { %v394_v22 = vpop.xlane.xlu1 %393  ;;  %v392_v23 = vpop.xlane.xlu0 %391 }
 0x223   : > { %v398_v24 = vadd.f32 %v394_v22, %v382_v20  ;;  %v397_v25 = vadd.f32 %v392_v23, %v381_v21 }
 0x225   : > { %402 = vst.msk [vmem:[%s709_s4 + $0x18] sm:$0xff] %vm374_vm5, %v398_v24  ;;  %401 = vst.msk [vmem:[%s709_s4 + $0x10] sm:$0xff] %vm374_vm5, %v397_v25 }
 0x226 PF: > { %s15_s15 = sadd.s32 1, %s482_s15  }
 0x227   : > { %p12_p7 = scmp.ge.s32.totalorder %s15_s15, 6  }
 0x229   :  { %14 = sbr.rel (!%p12_p7) target bundleno = 1 (0x1), region = 78 }

// kernel: double_conv_flair.4
= control target key start
LH: loop header
LB: loop body
LE: loop exit
PB: predicated region body
PF: predicated region fallthrough
CT: control target
= control target key end

     0   :  { %s896_s24 = smov 0   ;;  %s898_s25 = smov 0   ;;  %s1160_s0 = inlined_call_operand.vmem [shape: bf16[4,512], index: 0, kind: input, shape index: {}]   ;;  %s1161_s1 = inlined_call_operand.vmem [shape: bf16[32,4], index: 1, kind: input, shape index: {}]   ;;  %s1162_s2 = inlined_call_operand.vmem [shape: f32[32,1], index: 2, kind: input, shape index: {}]   ;;  %s1163_s3 = inlined_call_operand.vmem [shape: bf16[32,32], index: 3, kind: input, shape index: {}]   ;;  %s1164_s4 = inlined_call_operand.vmem [shape: f32[32,1], index: 4, kind: input, shape index: {}]   ;;  %s1165_s5 = inlined_call_operand.vmem [shape: bf16[32,512], index: 5, kind: output, shape index: {0}]   ;;  %s1166_s6 = inlined_call_operand.vmem [shape: f32[32,1], index: 6, kind: output, shape index: {1}]   ;;  %s1167_s7 = inlined_call_operand.vmem [shape: f32[32,1], index: 7, kind: output, shape index: {2}]  }
   0x1   :  { %s900_s26 = smov 0  }
   0x2 LB: > { %s907_s27 = sadd.s32 4294967295, %s852_s26   ;;  %s909_s28 = sadd.s32 1, %s852_s26   ;;  %s852_s26 = sphi %s900_s26, %s1171_s26   ;;  %s848_s25 = sphi %s898_s25, %s1170_s25   ;;  %s844_s24 = sphi %s896_s24, %s1169_s24  }
   0x3   : > { %s132_s29 = ssub.s32 %s852_s26, %s909_s28  ;;  %s135_s30 = sadd.s32 1, %s848_s25 }
   0x4   : > { %p133_p0 = scmp.eq.s32.totalorder %s132_s29, 0  ;;  %p145_p1 = scmp.ne.s32.totalorder %s848_s25, %s844_s24 }
   0x5   : > { %p146_p2 = scmp.eq.s32.totalorder %s907_s27, 3  ;;  %p738_p3 = scmp.ge.s32.totalorder %s852_s26, 1 }
   0x6   : > { %s916_s8 = scalar_select %p133_p0, %s848_s25, %s135_s30  }
   0x7   : > { %p920_p4 = por %p146_p2, %p145_p1  ;;  %p231_p5 = scmp.lt.s32.totalorder %s852_s26, 5 }
   0x9   : > { %p232_p6 = pnand %p738_p3, %p231_p5 }
   0xa   : > { %s254_s10 = sand.u32 (!%p232_p6), 1, %s844_s24   ;;  %p261_p7 = scmp.lt.s32.totalorder (!%p232_p6), %s907_s27, 3 }
   0xb   : > { %235 = sbr.rel (%p232_p6) target bundleno = 778 (0x30a), region = 40  ;;  %s739_s11 = sshll.u32 (!%p232_p6), %s254_s10, 4 }
   0xc   : > { %s929_s17 = scalar_lea.vmem (!%p232_p6), [#allocation2], %s739_s11  ;;  %p741_p8 = scmp.ne.s32.totalorder (!%p232_p6), %s907_s27, 0 }
  0x10   : > { %s262_s12 = scalar_select %p261_p7, %s907_s27, 3 }
  0x11   : > { %269 = sbr.rel (%p741_p8) target bundleno = 27 (0x1b), region = 44 }
  0x12   : > { %s740_s13 = sshll.u32 %s262_s12, 1 }
  0x13   : > { %s264_s16 = scalar_lea.vmem %s1160_s0, %s740_s13 }
  0x16   : > { %vm270_vm0 = vcmask 7168   ;;  %v854_v0 = vmov 0.0  }
  0x17   : > { %271 = vst.msk [vmem:[%s1166_s6] sm:$0xff] %vm270_vm0, %v854_v0  ;;  %272 = vst.msk [vmem:[%s1166_s6 + $0x8] sm:$0xff] %vm270_vm0, %v854_v0 }
  0x18   : > { %273 = vst.msk [vmem:[%s1166_s6 + $0x10] sm:$0xff] %vm270_vm0, %v854_v0  ;;  %274 = vst.msk [vmem:[%s1166_s6 + $0x18] sm:$0xff] %vm270_vm0, %v854_v0 }
  0x19   : > { %275 = vst.msk [vmem:[%s1167_s7] sm:$0xff] %vm270_vm0, %v854_v0  ;;  %276 = vst.msk [vmem:[%s1167_s7 + $0x8] sm:$0xff] %vm270_vm0, %v854_v0 }
  0x1a   : > { %277 = vst.msk [vmem:[%s1167_s7 + $0x10] sm:$0xff] %vm270_vm0, %v854_v0  ;;  %278 = vst.msk [vmem:[%s1167_s7 + $0x18] sm:$0xff] %vm270_vm0, %v854_v0 }
  0x1b PF: > { %v283_v1 = vld [vmem:[%s264_s16] sm:$0x3]  ;;  %vm325_vm1 = vcmask 1041408   ;;  %vm318_vm2 = vcmask 31744   ;;  %v827_v4 = vld [vmem:[%s1161_s1 + $0x8] sm:$0xff]   ;;  %v286_v5 = vld [vmem:[%s1162_s2 + $0x10] sm:$0xff] }
  0x1c   : > { %v826_v2 = vld [vmem:[%s1161_s1] sm:$0xff]   ;;  %797 = vmatprep.subr.msk.bf16.mxu0 %vm325_vm1, %v283_v1  ;;  %v327_v3 = vsel %vm325_vm1, %v283_v1, 0  ;;  %v855_v6 = vmov 0   ;;  %v287_v8 = vld [vmem:[%s1162_s2 + $0x18] sm:$0xff]  ;;  %v285_v9 = vld [vmem:[%s1162_s2 + $0x8] sm:$0xff]  ;;  %vm422_vm3 = vcmask 261120  }
  0x1d   : > { %784 = vmatpush3.bf16.msra.mxu0 %v327_v3  ;;  %785 = vmatprep.mubr.msk.bf16.mxu0 %vm318_vm2, %v826_v2  ;;  %v284_v7 = vld [vmem:[%s1162_s2] sm:$0xff]  ;;  %v389_v11 = vld [vmem:[%s1164_s4 + $0x8] sm:$0xff]  ;;  %v390_v12 = vld [vmem:[%s1164_s4 + $0x10] sm:$0xff] }
  0x1e   : > { %824 = vset.pattern.permute.xlu0 %v855_v6  ;;  %825 = vset.pattern.permute.xlu1 %v855_v6  ;;  %v388_v10 = vld [vmem:[%s1164_s4] sm:$0xff]  ;;  %v391_v13 = vld [vmem:[%s1164_s4 + $0x18] sm:$0xff]  ;;  %v829_v33 = vld [vmem:[%s1163_s3 + $0x8] sm:$0xff]  }
  0x1f   : > { %300 = vperm.xlu0 %824, %v286_v5   ;;  %290 = vperm.xlu1 %825, %v284_v7   ;;  %v828_v14 = vld [vmem:[%s1163_s3] sm:$0xff]  }
  0x20   : > { %786 = vmatmul.mubr.msk.bf16.vlgmr.msra.gmra.mxu0 %vm318_vm2, %v827_v4  ;;  %793 = vmatprep.mubr.msk.bf16.mxu1 %vm422_vm3, %v828_v14 }
  0x23   : > { %305 = vperm.xlu0 %824, %v287_v8   ;;  %295 = vperm.xlu1 %825, %v285_v9  }
  0x27   : > { %394 = vperm.xlu0 %824, %v388_v10   ;;  %399 = vperm.xlu1 %825, %v389_v11  }
  0x2b   : > { %404 = vperm.xlu0 %824, %v390_v12   ;;  %409 = vperm.xlu1 %825, %v391_v13  }
  0x9a   : > { %v301_v15 = vpop.permute.xlu0 %300  ;;  %v291_v16 = vpop.permute.xlu1 %290 }
  0x9e   : > { %v306_v20 = vpop.permute.xlu0 %305  ;;  %v296_v24 = vpop.permute.xlu1 %295 }
  0xa2   : > { %v395_v34 = vpop.permute.xlu0 %394  ;;  %v400_v35 = vpop.permute.xlu1 %399 }
  0xa6   : > { %v405_v36 = vpop.permute.xlu0 %404  ;;  %v410_v42 = vpop.permute.xlu1 %409 }
  0xe0   : > { %v787_v17 = vpop.f32.mrf.mxu0 }
  0xe1   : > { %v372_v19 = vadd.f32 %v787_v17, %v301_v15 }
  0xe2   : > { %v363_v18 = vpop.f32.mrf.mxu0 }
  0xe3   : > { %v364_v22 = vadd.f32 %v363_v18, %v291_v16  ;;  %v380_v26 = vmax.f32 %v372_v19, 0.0 }
  0xe4   : > { %v788_v21 = vpop.f32.mrf.mxu0 }
  0xe5   : > { %v375_v23 = vadd.f32 %v788_v21, %v306_v20  ;;  %v378_v29 = vmax.f32 %v364_v22, 0.0 }
  0xe6   : > { %v366_v25 = vpop.f32.mrf.mxu0 }
  0xe7   : > { %v381_v27 = vmax.f32 %v375_v23, 0.0  ;;  %v367_v28 = vadd.f32 %v366_v25, %v296_v24 }
  0xe9   : > { %v379_v30 = vmax.f32 %v367_v28, 0.0  ;;  %v387_v31 = vpack.c.bf16 %v381_v27, %v380_v26 }
  0xeb   : > { %v386_v32 = vpack.c.bf16 %v379_v30, %v378_v29  ;;  %789 = vmatprep.subr.bf16.mxu1 %v387_v31 }
  0xec   : > { %790 = vmatpush3.bf16.msra.mxu1 %v387_v31 }
  0xed   : > { %791 = vmatprep.subr.bf16.mxu1 %v386_v32 }
  0xf0   : > { %792 = vmatpush3.bf16.msra.mxu1 %v386_v32 }
  0xf3   : > { %794 = vmatmul.mubr.msk.bf16.vlgmr.msra.gmra.mxu1 %vm422_vm3, %v829_v33 }
 0x1b3   : > { %v795_v37 = vpop.f32.mrf.mxu1 }
 0x1b4   : > { %v472_v38 = vadd.f32 %v795_v37, %v405_v36 }
 0x1b5   : > { %v463_v39 = vpop.f32.mrf.mxu1 }
 0x1b6   : > { %v994_v40 = vmax.f32 %v472_v38, 0.0  ;;  %v464_v41 = vadd.f32 %v463_v39, %v395_v34 }
 0x1b7   : > { %v796_v43 = vpop.f32.mrf.mxu1 }
 0x1b8   : > { %v996_v44 = vmax.f32 %v464_v41, 0.0  ;;  %v475_v45 = vadd.f32 %v796_v43, %v410_v42  ;;  %485 = sbr.rel (%p146_p2) target bundleno = 598 (0x256), region = 48 }
 0x1b9   : > { %v466_v46 = vpop.f32.mrf.mxu1 }
 0x1ba   : > { %v998_v47 = vmax.f32 %v475_v45, 0.0  ;;  %v467_v48 = vadd.f32 %v466_v46, %v400_v35 }
 0x1bc   : > { %v1000_v49 = vmax.f32 %v467_v48, 0.0 }
 0x1bd   : > { %494 = vadd.xlane.f32.xlu1 %v994_v40  ;;  %490 = vadd.xlane.f32.xlu0 %v996_v44  ;;  %v511_v51 = vmul.f32 %v996_v44, %v996_v44  ;;  %v514_v52 = vmul.f32 %v998_v47, %v998_v47  ;;  %v513_v53 = vmul.f32 %v994_v40, %v994_v40  ;;  %v488_v54 = vld [vmem:[%s1166_s6 + $0x10] sm:$0xff]  ;;  %v486_v55 = vld [vmem:[%s1166_s6] sm:$0xff]  ;;  %vm502_vm4 = vcmask 7168   ;;  %v489_v60 = vld [vmem:[%s1166_s6 + $0x18] sm:$0xff] }
 0x1be   : > { %v512_v50 = vmul.f32 %v1000_v49, %v1000_v49  ;;  %v487_v61 = vld [vmem:[%s1166_s6 + $0x8] sm:$0xff]  ;;  %v507_v3 = vld [vmem:[%s1167_s7] sm:$0xff]  ;;  %v510_v8 = vld [vmem:[%s1167_s7 + $0x18] sm:$0xff] }
 0x1bf   : > { %v508_v2 = vld [vmem:[%s1167_s7 + $0x8] sm:$0xff]  ;;  %v509_v9 = vld [vmem:[%s1167_s7 + $0x10] sm:$0xff] }
 0x1c1   : > { %496 = vadd.xlane.f32.xlu1 %v998_v47  ;;  %492 = vadd.xlane.f32.xlu0 %v1000_v49 }
 0x1c5   : > { %517 = vadd.xlane.f32.xlu1 %v512_v50  ;;  %515 = vadd.xlane.f32.xlu0 %v511_v51 }
 0x1c9   : > { %521 = vadd.xlane.f32.xlu1 %v514_v52  ;;  %519 = vadd.xlane.f32.xlu0 %v513_v53 }
 0x246   : > { %v495_v56 = vpop.xlane.xlu1 %494  ;;  %v491_v57 = vpop.xlane.xlu0 %490 }
 0x247   : > { %v500_v58 = vadd.f32 %v495_v56, %v488_v54  ;;  %v498_v59 = vadd.f32 %v491_v57, %v486_v55 }
 0x249   : > { %505 = vst.msk [vmem:[%s1166_s6 + $0x10] sm:$0xff] %vm502_vm4, %v500_v58  ;;  %503 = vst.msk [vmem:[%s1166_s6] sm:$0xff] %vm502_vm4, %v498_v59 }
 0x24a   : > { %v497_v62 = vpop.xlane.xlu1 %496  ;;  %v493_v63 = vpop.xlane.xlu0 %492 }
 0x24b   : > { %v501_v0 = vadd.f32 %v497_v62, %v489_v60  ;;  %v499_v1 = vadd.f32 %v493_v63, %v487_v61 }
 0x24d   : > { %506 = vst.msk [vmem:[%s1166_s6 + $0x18] sm:$0xff] %vm502_vm4, %v501_v0  ;;  %504 = vst.msk [vmem:[%s1166_s6 + $0x8] sm:$0xff] %vm502_vm4, %v499_v1 }
 0x24e   : > { %v518_v4 = vpop.xlane.xlu1 %517  ;;  %v516_v5 = vpop.xlane.xlu0 %515 }
 0x24f   : > { %v524_v6 = vadd.f32 %v518_v4, %v508_v2  ;;  %v523_v7 = vadd.f32 %v516_v5, %v507_v3 }
 0x251   : > { %528 = vst.msk [vmem:[%s1167_s7 + $0x8] sm:$0xff] %vm502_vm4, %v524_v6  ;;  %527 = vst.msk [vmem:[%s1167_s7] sm:$0xff] %vm502_vm4, %v523_v7 }
 0x252   : > { %v522_v10 = vpop.xlane.xlu1 %521  ;;  %v520_v11 = vpop.xlane.xlu0 %519 }
 0x253   : > { %v526_v12 = vadd.f32 %v522_v10, %v510_v8  ;;  %v525_v13 = vadd.f32 %v520_v11, %v509_v9 }
 0x255   : > { %530 = vst.msk [vmem:[%s1167_s7 + $0x18] sm:$0xff] %vm502_vm4, %v526_v12  ;;  %529 = vst.msk [vmem:[%s1167_s7 + $0x10] sm:$0xff] %vm502_vm4, %v525_v13 }
 0x256 PF: > { %p751_p9 = scmp.ne.s32.totalorder %s907_s27, 3 }
 0x257   : > { %s752_s23 = sshll.u32 (!%p751_p9), %s907_s27, 7 }
 0x258   : > { %534 = sbr.rel (%p751_p9) target bundleno = 766 (0x2fe), region = 52 }
 0x25d   : > { %v535_v14 = vlaneseq  ;;  %v538_v15 = vstv %s752_s23  ;;  %v547_v26 = vld [vmem:[%s1166_s6 + $0x10] sm:$0xff]  ;;  %v545_v27 = vld [vmem:[%s1166_s6] sm:$0xff]  ;;  %vm561_vm6 = vcmask 7168   ;;  %v548_v32 = vld [vmem:[%s1166_s6 + $0x18] sm:$0xff] }
 0x25e   : > { %v546_v33 = vld [vmem:[%s1166_s6 + $0x8] sm:$0xff]  ;;  %v566_v39 = vld [vmem:[%s1167_s7] sm:$0xff]  ;;  %v569_v46 = vld [vmem:[%s1167_s7 + $0x18] sm:$0xff] }
 0x25f   : > { %v536_v16 = vand.u32 127, %v535_v14  ;;  %v567_v38 = vld [vmem:[%s1167_s7 + $0x8] sm:$0xff]  ;;  %v568_v48 = vld [vmem:[%s1167_s7 + $0x10] sm:$0xff] }
 0x261   : > { %v539_v17 = vadd.s32 %v538_v15, %v536_v16 }
 0x263   : > { %vm540_vm5 = vcmp.lt.s32.totalorder %v539_v17, 512 }
 0x264   : > { %v543_v18 = vsel %vm540_vm5, %v994_v40, 0.0  ;;  %v541_v19 = vsel %vm540_vm5, %v996_v44, 0.0  ;;  %v544_v20 = vsel %vm540_vm5, %v998_v47, 0.0  ;;  %v542_v21 = vsel %vm540_vm5, %v1000_v49, 0.0 }
 0x265   : > { %553 = vadd.xlane.f32.xlu1 %v543_v18  ;;  %549 = vadd.xlane.f32.xlu0 %v541_v19  ;;  %v571_v22 = vmul.f32 %v542_v21, %v542_v21  ;;  %v570_v23 = vmul.f32 %v541_v19, %v541_v19  ;;  %v573_v24 = vmul.f32 %v544_v20, %v544_v20 }
 0x266   : > { %v572_v25 = vmul.f32 %v543_v18, %v543_v18 }
 0x269   : > { %555 = vadd.xlane.f32.xlu1 %v544_v20  ;;  %551 = vadd.xlane.f32.xlu0 %v542_v21 }
 0x26d   : > { %576 = vadd.xlane.f32.xlu1 %v571_v22  ;;  %574 = vadd.xlane.f32.xlu0 %v570_v23 }
 0x271   : > { %580 = vadd.xlane.f32.xlu1 %v573_v24  ;;  %578 = vadd.xlane.f32.xlu0 %v572_v25 }
 0x2ee   : > { %v554_v28 = vpop.xlane.xlu1 %553  ;;  %v550_v29 = vpop.xlane.xlu0 %549 }
 0x2ef   : > { %v559_v30 = vadd.f32 %v554_v28, %v547_v26  ;;  %v557_v31 = vadd.f32 %v550_v29, %v545_v27 }
 0x2f1   : > { %564 = vst.msk [vmem:[%s1166_s6 + $0x10] sm:$0xff] %vm561_vm6, %v559_v30  ;;  %562 = vst.msk [vmem:[%s1166_s6] sm:$0xff] %vm561_vm6, %v557_v31 }
 0x2f2   : > { %v556_v34 = vpop.xlane.xlu1 %555  ;;  %v552_v35 = vpop.xlane.xlu0 %551 }
 0x2f3   : > { %v560_v36 = vadd.f32 %v556_v34, %v548_v32  ;;  %v558_v37 = vadd.f32 %v552_v35, %v546_v33 }
 0x2f5   : > { %565 = vst.msk [vmem:[%s1166_s6 + $0x18] sm:$0xff] %vm561_vm6, %v560_v36  ;;  %563 = vst.msk [vmem:[%s1166_s6 + $0x8] sm:$0xff] %vm561_vm6, %v558_v37 }
 0x2f6   : > { %v577_v41 = vpop.xlane.xlu1 %576  ;;  %v575_v42 = vpop.xlane.xlu0 %574 }
 0x2f7   : > { %v583_v43 = vadd.f32 %v577_v41, %v567_v38  ;;  %v582_v45 = vadd.f32 %v575_v42, %v566_v39 }
 0x2f9   : > { %587 = vst.msk [vmem:[%s1167_s7 + $0x8] sm:$0xff] %vm561_vm6, %v583_v43  ;;  %586 = vst.msk [vmem:[%s1167_s7] sm:$0xff] %vm561_vm6, %v582_v45 }
 0x2fa   : > { %v581_v50 = vpop.xlane.xlu1 %580  ;;  %v579_v51 = vpop.xlane.xlu0 %578 }
 0x2fb   : > { %v585_v52 = vadd.f32 %v581_v50, %v569_v46  ;;  %v584_v53 = vadd.f32 %v579_v51, %v568_v48 }
 0x2fd   : > { %589 = vst.msk [vmem:[%s1167_s7 + $0x18] sm:$0xff] %vm561_vm6, %v585_v52  ;;  %588 = vst.msk [vmem:[%s1167_s7 + $0x10] sm:$0xff] %vm561_vm6, %v584_v53 }
 0x2fe PF: > { %v768_v54 = vpack.c.bf16 %v1000_v49, %v996_v44  ;;  %v773_v55 = vpack.c.bf16 %v998_v47, %v994_v40  ;;  %616 = sbr.rel (!%p920_p4) target bundleno = 778 (0x30a), region = 56  ;;  %s758_s22 = sshll.u32 (%p920_p4), %s907_s27, 2 }
 0x2ff   : > { %s618_s24 = scalar_lea.vmem (%p920_p4), %s1165_s5, %s758_s22 }
 0x300   : > { %769 = vst [vmem:[%s929_s17] sm:$0xff] %v768_v54   ;;  %775 = vst [vmem:[%s929_s17 + $0x8] sm:$0xff] %v773_v55  }
 0x307   : > { %v635_v56 = vld [vmem:[%s929_s17] sm:$0xf]  ;;  %v637_v57 = vld [vmem:[%s929_s17 + $0x4] sm:$0xf]  ;;  %v639_v44 = vld [vmem:[%s929_s17 + $0x8] sm:$0xf] }
 0x308   : > { %v641_v49 = vld [vmem:[%s929_s17 + $0xc] sm:$0xf]  ;;  %636 = vst [vmem:[%s618_s24] sm:$0xf] %v635_v56  ;;  %638 = vst [vmem:[%s618_s24 + $0x10] sm:$0xf] %v637_v57 }
 0x309   : > { %640 = vst [vmem:[%s618_s24 + $0x20] sm:$0xf] %v639_v44  ;;  %642 = vst [vmem:[%s618_s24 + $0x30] sm:$0xf] %v641_v49 }
 0x30a PF: > { %p15_p10 = scmp.ge.s32.totalorder %s909_s28, 6   ;;  %s1169_s24 = smov %s848_s25 }
 0x30b   : > { %s1170_s25 = smov %s916_s8  ;;  %s1171_s26 = smov %s909_s28 }
 0x30c   :  { %17 = sbr.rel (!%p15_p10) target bundleno = 2 (0x2), region = 139 }

</bundles_post_ra>
